<compile_context>
chip_gen: v5e
topology: v5e:2x2
jax: 0.10.0
libtpu: 0.0.40
codegen_flags: <defaults>
</compile_context>

<pallas_src>
import math

import jax
import jax.numpy as jnp
from jax import lax
from jax.experimental import pallas as pl
from jax.experimental.pallas import tpu as pltpu


def _round_up(x, m):
    return (x + m - 1) // m * m


def _pointer_net_kernel(q_in_ref, k_in_ref, wq_ref, bq_ref, wk_ref, bk_ref,
                        mask_ref, out_ref, keys_vmem):
    compute_dtype = wq_ref.dtype

    # Project keys once per batch element (j == 0); the bf16 VMEM scratch
    # persists across the Lq-tile axis ("arbitrary" -> sequential per batch).
    @pl.when(pl.program_id(1) == 0)
    def _():
        k_proj = (jnp.dot(k_in_ref[0].astype(compute_dtype), wk_ref[...],
                          preferred_element_type=jnp.float32)
                  + bk_ref[...])                                     # (Lk_pad, D) f32
        keys_vmem[...] = k_proj.astype(keys_vmem.dtype)

    # Query projection; the 1/sqrt(d_model) scale is folded into wq/bq in the
    # wrapper, so no per-score multiply is needed.
    queries = (jnp.dot(q_in_ref[0].astype(compute_dtype), wq_ref[...],
                       preferred_element_type=jnp.float32)
               + bq_ref[...])                                        # (tq, D) f32

    # scores = Q @ K^T as a contraction over the last dims of both operands —
    # Mosaic feeds the MXU a transposed-RHS matmul, no materialized .T.
    scores = lax.dot_general(
        queries.astype(keys_vmem.dtype), keys_vmem[...],
        dimension_numbers=(((1,), (1,)), ((), ())),
        preferred_element_type=jnp.float32)                          # (tq, Lk_pad)

    # masked_fill(mask, -inf); mask is int8, 1 == masked out (pad cols == 1).
    scores = jnp.where(mask_ref[0] != 0, -jnp.inf, scores)
    out_ref[0] = scores.astype(out_ref.dtype)


def dynamic_pointer_network(query_inputs, key_inputs, key_attention_mask,
                            wq, bq, wk, bk, *,
                            compute_dtype=jnp.bfloat16,
                            return_padded=False):
    """JAX/Pallas equivalent of DynamicPointerNetwork.forward.

    query_inputs:       (B, Lq, D) float32
    key_inputs:         (B, Lk, D) float32
    key_attention_mask: (B, 1, Lq, Lk) bool (True == masked out)
    wq, wk:             (D, D) PyTorch nn.Linear weights (out, in)
    bq, bk:             (D,)   biases
    """
    B, Lq, D = query_inputs.shape
    Lk = key_inputs.shape[1]

    scale = 1.0 / math.sqrt(D)
    # nn.Linear: y = x @ W^T + b.  Pre-transpose once, fold the 1/sqrt(D) scale
    # into the query projection, and ship the weights in the MXU compute dtype.
    wq_t = (jnp.asarray(wq, jnp.float32) * scale).T.astype(compute_dtype)
    wk_t = jnp.asarray(wk, jnp.float32).T.astype(compute_dtype)
    bq2 = (jnp.asarray(bq, jnp.float32) * scale).reshape(1, D)
    bk2 = jnp.asarray(bk, jnp.float32).reshape(1, D)

    # int8 mask: 1/4 of the HBM bytes an int32 mask would cost.
    mask = jnp.squeeze(key_attention_mask, axis=1).astype(jnp.int8)  # (B, Lq, Lk)

    Lk_pad = _round_up(Lk, 128)
    itemsize = jnp.dtype(compute_dtype).itemsize

    # VMEM budget: ~85% of the physical VMEM (leaves Mosaic internal-scratch /
    # semaphore headroom, which matters on v7x's 64 MiB).  Fallback is v7x-safe.
    try:
        vmem_cap = int(pltpu.get_tpu_info().vmem_capacity_bytes)
    except Exception:
        vmem_cap = 64 * 1024 * 1024
    budget = int(vmem_cap * 0.85)

    def footprint(tq_):
        return (2 * tq_ * D * 4                    # query block (f32, x2 buffers)
                + Lk_pad * D * 4                   # key block (f32, single buffer)
                + 2 * D * D * itemsize             # Wq^T + Wk^T (single buffer)
                + 2 * 8 * _round_up(D, 128) * 4    # biases (padded (8,128) tiles)
                + 2 * tq_ * Lk_pad                 # mask block (int8, x2 buffers)
                + 2 * tq_ * Lk_pad * 4             # output block (f32, x2 buffers)
                + Lk_pad * D * itemsize)           # resident projected-K scratch

    if Lq <= 128:
        # int8 mask native tile is (32, 128): round tiny Lq up to 32, not 8.
        tq = _round_up(Lq, 32)
    elif Lq >= 256 and footprint(256) <= budget:
        # Fill the 256x256 MXU on v6e/v7x and halve the grid-step overhead.
        tq = 256
    else:
        tq = 128
    # TODO(synk): add an Lk grid axis (tile the resident K projection) for the
    # case footprint(tq) > budget (very long key sequences on v7x's 64 MiB).

    Lq_pad = _round_up(Lq, tq)

    if Lq_pad != Lq:
        query_inputs = jnp.pad(query_inputs, ((0, 0), (0, Lq_pad - Lq), (0, 0)))
    if Lk_pad != Lk:
        key_inputs = jnp.pad(key_inputs, ((0, 0), (0, Lk_pad - Lk), (0, 0)))
    if Lq_pad != Lq or Lk_pad != Lk:
        # Pad the mask with 1 (== masked): padded key columns come out as -inf,
        # so the padded output is safe for downstream softmax if kept.
        mask = jnp.pad(mask, ((0, 0), (0, Lq_pad - Lq), (0, Lk_pad - Lk)),
                       constant_values=1)

    n_q = Lq_pad // tq
    vmem_limit = int(max(32 * 1024 * 1024, min(budget, 2 * footprint(tq))))

    out = pl.pallas_call(
        _pointer_net_kernel,
        out_shape=jax.ShapeDtypeStruct((B, Lq_pad, Lk_pad), jnp.float32),
        grid_spec=pltpu.PrefetchScalarGridSpec(
            num_scalar_prefetch=0,
            grid=(B, n_q),
            in_specs=[
                # query block: changes every step -> default double buffering.
                pl.BlockSpec((1, tq, D), lambda b, j: (b, j, 0)),
                # key block: only read at j == 0 of each batch -> single buffer.
                pl.BlockSpec((1, Lk_pad, D), lambda b, j: (b, 0, 0),
                             pipeline_mode=pl.Buffered(1)),
                # constant weights / biases: block index never changes, so the
                # second pipeline buffer would never be used -> single buffer.
                pl.BlockSpec((D, D), lambda b, j: (0, 0),
                             pipeline_mode=pl.Buffered(1)),              # Wq^T (scaled, bf16)
                pl.BlockSpec((1, D), lambda b, j: (0, 0),
                             pipeline_mode=pl.Buffered(1)),              # bq (scaled, f32)
                pl.BlockSpec((D, D), lambda b, j: (0, 0),
                             pipeline_mode=pl.Buffered(1)),              # Wk^T (bf16)
                pl.BlockSpec((1, D), lambda b, j: (0, 0),
                             pipeline_mode=pl.Buffered(1)),              # bk (f32)
                # mask block (int8).
                pl.BlockSpec((1, tq, Lk_pad), lambda b, j: (b, j, 0)),
            ],
            out_specs=pl.BlockSpec((1, tq, Lk_pad), lambda b, j: (b, j, 0)),
            scratch_shapes=[pltpu.VMEM((Lk_pad, D), compute_dtype)],
        ),
        compiler_params=pltpu.CompilerParams(
            # Lq-tile axis stays "arbitrary": keys_vmem is filled at j == 0 and
            # reused for the remaining q tiles of that batch.
            # TODO(synk): for B == 1 on v7x, split the q-tile range across the
            # two TensorCores (project K redundantly per core) to avoid idling
            # one core.
            dimension_semantics=("parallel", "arbitrary"),
            vmem_limit_bytes=vmem_limit),
    )(query_inputs, key_inputs, wq_t, bq2, wk_t, bk2, mask)

    if return_padded or (Lq_pad == Lq and Lk_pad == Lk):
        return out
    return out[:, :Lq, :Lk]


if __name__ == "__main__":
    B, Lq, Lk, D = 2, 8, 8, 32

    key = jax.random.PRNGKey(0)
    k1, k2, k3, k4, k5, k6, k7 = jax.random.split(key, 7)

    # Deterministic parameter init (shapes follow nn.Linear(D, D)).
    bound = 1.0 / math.sqrt(D)
    wq = jax.random.uniform(k1, (D, D), jnp.float32, -bound, bound)
    bq = jax.random.uniform(k2, (D,), jnp.float32, -bound, bound)
    wk = jax.random.uniform(k3, (D, D), jnp.float32, -bound, bound)
    bk = jax.random.uniform(k4, (D,), jnp.float32, -bound, bound)

    query_inputs = jax.random.normal(k5, (B, Lq, D), jnp.float32)
    key_inputs = jax.random.normal(k6, (B, Lk, D), jnp.float32)
    key_attention_mask = jax.random.bernoulli(k7, 0.25, (B, 1, Lq, Lk))

    scores = dynamic_pointer_network(query_inputs, key_inputs,
                                     key_attention_mask, wq, bq, wk, bk)
    scores = jax.block_until_ready(scores)

    # Pure-JAX f32 reference (keeps masked_fill(-inf) semantics).
    q_ref = query_inputs @ wq.T + bq
    k_ref = key_inputs @ wk.T + bk
    ref = jnp.einsum("bqd,bkd->bqk", q_ref, k_ref) / math.sqrt(D)
    ref = jnp.where(jnp.squeeze(key_attention_mask, 1), -jnp.inf, ref)

    finite = jnp.isfinite(ref)
    assert scores.shape == (B, Lq, Lk)
    assert bool(jnp.all(jnp.isfinite(scores) == finite))
    # bf16 MXU operands (f32 accumulation) -> relaxed tolerance vs the f32 ref.
    assert bool(jnp.allclose(jnp.where(finite, scores, 0.0),
                             jnp.where(finite, ref, 0.0),
                             atol=2e-2, rtol=2e-2))

    print("KERNEL_OK")
</pallas_src>

<mosaic_0001>
module attributes {stable_mosaic.version = 11 : i64} {
  func.func @_pointer_net_kernel(%arg0: i32, %arg1: i32, %arg2: memref<1x32x32xf32, #tpu.memory_space<vmem>>, %arg3: memref<1x128x32xf32, #tpu.memory_space<vmem>>, %arg4: memref<32x32xbf16, #tpu.memory_space<vmem>>, %arg5: memref<1x32xf32, #tpu.memory_space<vmem>>, %arg6: memref<32x32xbf16, #tpu.memory_space<vmem>>, %arg7: memref<1x32xf32, #tpu.memory_space<vmem>>, %arg8: memref<1x32x128xi8, #tpu.memory_space<vmem>>, %arg9: memref<1x32x128xf32, #tpu.memory_space<vmem>>, %arg10: memref<128x32xbf16, #tpu.memory_space<vmem>>) attributes {dimension_semantics = [#tpu.dimension_semantics<parallel>, #tpu.dimension_semantics<arbitrary>], iteration_bounds = array<i64: 2, 1>, scalar_prefetch = 0 : i64, scratch_operands = 1 : i64, tpu.core_type = #tpu.core_type<tc>, window_params = [{transform_indices = @transform_0, window_bounds = array<i64: 1, 32, 32>}, {pipeline_mode = #tpu.pipeline_mode<synchronous>, transform_indices = @transform_1, window_bounds = array<i64: 1, 128, 32>}, {pipeline_mode = #tpu.pipeline_mode<synchronous>, transform_indices = @transform_2, window_bounds = array<i64: 32, 32>}, {pipeline_mode = #tpu.pipeline_mode<synchronous>, transform_indices = @transform_3, window_bounds = array<i64: 1, 32>}, {pipeline_mode = #tpu.pipeline_mode<synchronous>, transform_indices = @transform_4, window_bounds = array<i64: 32, 32>}, {pipeline_mode = #tpu.pipeline_mode<synchronous>, transform_indices = @transform_5, window_bounds = array<i64: 1, 32>}, {transform_indices = @transform_6, window_bounds = array<i64: 1, 32, 128>}, {transform_indices = @transform_7, window_bounds = array<i64: 1, 32, 128>}]} {
    %c0_i32 = arith.constant 0 : i32
    %0 = arith.cmpi eq, %arg1, %c0_i32 : i32
    %1 = arith.extui %0 : i1 to i32
    %c0_i32_0 = arith.constant 0 : i32
    %2 = arith.cmpi ne, %1, %c0_i32_0 : i32
    scf.if %2 {
      %c0_17 = arith.constant 0 : index
      %c0_18 = arith.constant 0 : index
      %c0_19 = arith.constant 0 : index
      %23 = vector.load %arg3[%c0_17, %c0_18, %c0_19] : memref<1x128x32xf32, #tpu.memory_space<vmem>>, vector<1x128x32xf32>
      %24 = vector.shape_cast %23 : vector<1x128x32xf32> to vector<128x32xf32>
      %25 = arith.truncf %24 : vector<128x32xf32> to vector<128x32xbf16>
      %c0_20 = arith.constant 0 : index
      %c0_21 = arith.constant 0 : index
      %26 = vector.load %arg6[%c0_20, %c0_21] : memref<32x32xbf16, #tpu.memory_space<vmem>>, vector<32x32xbf16>
      %cst_22 = arith.constant dense<0.000000e+00> : vector<128x32xf32>
      %27 = tpu.matmul %25, %26, %cst_22 {dimension_numbers = #tpu.dot_dimension_numbers<[1], [0], [0], [1], [0, 0, 1, 1], [], []>} : vector<128x32xbf16>, vector<32x32xbf16>, vector<128x32xf32> -> vector<128x32xf32>
      %c0_23 = arith.constant 0 : index
      %c0_24 = arith.constant 0 : index
      %28 = vector.load %arg7[%c0_23, %c0_24] : memref<1x32xf32, #tpu.memory_space<vmem>>, vector<1x32xf32>
      %29 = vector.broadcast %28 : vector<1x32xf32> to vector<128x32xf32>
      %30 = arith.addf %27, %29 : vector<128x32xf32>
      %31 = arith.truncf %30 : vector<128x32xf32> to vector<128x32xbf16>
      %c0_25 = arith.constant 0 : index
      %c0_26 = arith.constant 0 : index
      %32 = vector.load %arg10[%c0_25, %c0_26] : memref<128x32xbf16, #tpu.memory_space<vmem>>, vector<128x32xbf16>
      tpu.vector_store %arg10[%c0_25, %c0_26], %31 {strides = array<i32>} : memref<128x32xbf16, #tpu.memory_space<vmem>>, vector<128x32xbf16>,
    } else {
    }
    %c0 = arith.constant 0 : index
    %c0_1 = arith.constant 0 : index
    %c0_2 = arith.constant 0 : index
    %3 = vector.load %arg2[%c0, %c0_1, %c0_2] : memref<1x32x32xf32, #tpu.memory_space<vmem>>, vector<1x32x32xf32>
    %4 = vector.shape_cast %3 : vector<1x32x32xf32> to vector<32x32xf32>
    %5 = arith.truncf %4 : vector<32x32xf32> to vector<32x32xbf16>
    %c0_3 = arith.constant 0 : index
    %c0_4 = arith.constant 0 : index
    %6 = vector.load %arg4[%c0_3, %c0_4] : memref<32x32xbf16, #tpu.memory_space<vmem>>, vector<32x32xbf16>
    %cst = arith.constant dense<0.000000e+00> : vector<32x32xf32>
    %7 = tpu.matmul %5, %6, %cst {dimension_numbers = #tpu.dot_dimension_numbers<[1], [0], [0], [1], [0, 0, 1, 1], [], []>} : vector<32x32xbf16>, vector<32x32xbf16>, vector<32x32xf32> -> vector<32x32xf32>
    %c0_5 = arith.constant 0 : index
    %c0_6 = arith.constant 0 : index
    %8 = vector.load %arg5[%c0_5, %c0_6] : memref<1x32xf32, #tpu.memory_space<vmem>>, vector<1x32xf32>
    %9 = vector.broadcast %8 : vector<1x32xf32> to vector<32x32xf32>
    %10 = arith.addf %7, %9 : vector<32x32xf32>
    %11 = arith.truncf %10 : vector<32x32xf32> to vector<32x32xbf16>
    %c0_7 = arith.constant 0 : index
    %c0_8 = arith.constant 0 : index
    %12 = vector.load %arg10[%c0_7, %c0_8] : memref<128x32xbf16, #tpu.memory_space<vmem>>, vector<128x32xbf16>
    %cst_9 = arith.constant dense<0.000000e+00> : vector<32x128xf32>
    %13 = tpu.matmul %11, %12, %cst_9 {dimension_numbers = #tpu.dot_dimension_numbers<[1], [1], [0], [0], [0, 0, 1, 0], [], []>} : vector<32x32xbf16>, vector<128x32xbf16>, vector<32x128xf32> -> vector<32x128xf32>
    %c0_10 = arith.constant 0 : index
    %c0_11 = arith.constant 0 : index
    %c0_12 = arith.constant 0 : index
    %14 = vector.load %arg8[%c0_10, %c0_11, %c0_12] : memref<1x32x128xi8, #tpu.memory_space<vmem>>, vector<1x32x128xi8>
    %15 = vector.shape_cast %14 : vector<1x32x128xi8> to vector<32x128xi8>
    %c0_i8 = arith.constant 0 : i8
    %16 = vector.broadcast %c0_i8 : i8 to vector<32x128xi8>
    %17 = arith.cmpi ne, %15, %16 : vector<32x128xi8>
    %cst_13 = arith.constant 0xFF800000 : f32
    %18 = vector.broadcast %cst_13 : f32 to vector<32x128xf32>
    %19 = arith.select %17, %18, %13 : vector<32x128xi1>, vector<32x128xf32>
    %c0_14 = arith.constant 0 : index
    %c0_15 = arith.constant 0 : index
    %c0_16 = arith.constant 0 : index
    %20 = vector.load %arg9[%c0_14, %c0_15, %c0_16] : memref<1x32x128xf32, #tpu.memory_space<vmem>>, vector<1x32x128xf32>
    %21 = vector.shape_cast %20 : vector<1x32x128xf32> to vector<32x128xf32>
    %22 = vector.shape_cast %19 : vector<32x128xf32> to vector<1x32x128xf32>
    tpu.vector_store %arg9[%c0_14, %c0_15, %c0_16], %22 {strides = array<i32>} : memref<1x32x128xf32, #tpu.memory_space<vmem>>, vector<1x32x128xf32>,
    return
  }
  func.func @transform_0(%arg0: i32, %arg1: i32) -> (i32, i32, i32) {
    %c0_i32 = arith.constant 0 : i32
    %c0_i32_0 = arith.constant 0 : i32
    return %arg0, %arg1, %c0_i32 : i32, i32, i32
  }
  func.func @transform_1(%arg0: i32, %arg1: i32) -> (i32, i32, i32) {
    %c0_i32 = arith.constant 0 : i32
    %c0_i32_0 = arith.constant 0 : i32
    %c0_i32_1 = arith.constant 0 : i32
    return %arg0, %c0_i32, %c0_i32_0 : i32, i32, i32
  }
  func.func @transform_2(%arg0: i32, %arg1: i32) -> (i32, i32) {
    %c0_i32 = arith.constant 0 : i32
    %c0_i32_0 = arith.constant 0 : i32
    %c0_i32_1 = arith.constant 0 : i32
    return %c0_i32, %c0_i32_0 : i32, i32
  }
  func.func @transform_3(%arg0: i32, %arg1: i32) -> (i32, i32) {
    %c0_i32 = arith.constant 0 : i32
    %c0_i32_0 = arith.constant 0 : i32
    %c0_i32_1 = arith.constant 0 : i32
    return %c0_i32, %c0_i32_0 : i32, i32
  }
  func.func @transform_4(%arg0: i32, %arg1: i32) -> (i32, i32) {
    %c0_i32 = arith.constant 0 : i32
    %c0_i32_0 = arith.constant 0 : i32
    %c0_i32_1 = arith.constant 0 : i32
    return %c0_i32, %c0_i32_0 : i32, i32
  }
  func.func @transform_5(%arg0: i32, %arg1: i32) -> (i32, i32) {
    %c0_i32 = arith.constant 0 : i32
    %c0_i32_0 = arith.constant 0 : i32
    %c0_i32_1 = arith.constant 0 : i32
    return %c0_i32, %c0_i32_0 : i32, i32
  }
  func.func @transform_6(%arg0: i32, %arg1: i32) -> (i32, i32, i32) {
    %c0_i32 = arith.constant 0 : i32
    %c0_i32_0 = arith.constant 0 : i32
    return %arg0, %arg1, %c0_i32 : i32, i32, i32
  }
  func.func @transform_7(%arg0: i32, %arg1: i32) -> (i32, i32, i32) {
    %c0_i32 = arith.constant 0 : i32
    %c0_i32_0 = arith.constant 0 : i32
    return %arg0, %arg1, %c0_i32 : i32, i32, i32
  }
}

</mosaic_0001>

<bundles_post_ra>
// kernel: tpu_custom_call.1
= control target key start
LH: loop header
LB: loop body
LE: loop exit
PB: predicated region body
PF: predicated region fallthrough
CT: control target
= control target key end

     0   :  { %12 = vsyncpa [#allocation4], 0  ;;  %s1325_s0 = inlined_call_operand.vmem [shape: f32[2,32,32], index: 0, kind: input, shape index: {}]   ;;  %s1326_s1 = inlined_call_operand.vmem [shape: f32[2,128,32], index: 1, kind: input, shape index: {}]   ;;  %s1327_s2 = inlined_call_operand.vmem [shape: bf16[32,32], index: 2, kind: input, shape index: {}]   ;;  %s1328_s3 = inlined_call_operand.vmem [shape: f32[1,32], index: 3, kind: input, shape index: {}]   ;;  %s1329_s4 = inlined_call_operand.vmem [shape: bf16[32,32], index: 4, kind: input, shape index: {}]   ;;  %s1330_s5 = inlined_call_operand.vmem [shape: f32[1,32], index: 5, kind: input, shape index: {}]   ;;  %s1331_s6 = inlined_call_operand.vmem [shape: s8[2,32,128], index: 6, kind: input, shape index: {}]   ;;  %s1332_s7 = inlined_call_operand.hbm [shape: f32[2,32,128], index: 7, kind: output, shape index: {}]  }
   0x1   :  { %14 = vsyncpa [#allocation4 + $0x1], 0  ;;  %s1123_s24 = smov 0   ;;  %s1125_s25 = smov 0  }
   0x2   :  { %s1127_s26 = smov 0   ;;  %s1129_s27 = smov 0  }
   0x3   :  { %s1131_s28 = smov 0   ;;  %s1133_s29 = smov 0  }
   0x4 LB: > { %s839_s30 = sadd.s32 4294967295, %s1078_s29   ;;  %s840_s8 = sadd.s32 4294967294, %s1078_s29   ;;  %s1078_s29 = sphi %s1133_s29, %s20_s29   ;;  %s1074_s28 = sphi %s1131_s28, %s1339_s28   ;;  %s1070_s27 = sphi %s1129_s27, %s1338_s27   ;;  %s1066_s26 = sphi %s1127_s26, %s1337_s26   ;;  %s1062_s25 = sphi %s1125_s25, %s1336_s25   ;;  %s1058_s24 = sphi %s1123_s24, %s1335_s24  }
   0x5   : > { %s32_s9 = sadd.s32 1, %s1074_s28  ;;  %s207_s10 = sadd.s32 1, %s1066_s26 }
   0x6   : > { %p34_p0 = scmp.ge.s32.totalorder %s32_s9, 2  ;;  %p217_p1 = scmp.ne.s32.totalorder %s1066_s26, %s1062_s25 }
   0x7   : > { %p218_p2 = scmp.eq.s32.totalorder %s839_s30, 1  ;;  %p223_p3 = scmp.ne.s32.totalorder %s1062_s25, %s1058_s24 }
   0x8   : > { %s1341_s9 = smov (%p34_p0, %s32_s9), 0  ;;  %p224_p5 = scmp.eq.s32.totalorder %s840_s8, 1 }
   0x9   : > { %p1163_p4 = por %p218_p2, %p217_p1  ;;  %s202_s12 = ssub.s32 %s1074_s28, %s1341_s9 }
   0xa   : > { %p843_p6 = scmp.ge.s32.totalorder %s1078_s29, 1  ;;  %p205_p7 = scmp.eq.s32.totalorder %s202_s12, 0 }
   0xb   : > { %p1170_p8 = por %p224_p5, %p223_p3  ;;  %p285_p9 = scmp.lt.s32.totalorder %s1078_s29, 3 }
   0xc   : > { %s1176_s14 = scalar_select %p205_p7, %s1066_s26, %s207_s10  }
   0xd   : > { %p286_p10 = pnand %p843_p6, %p285_p9 }
   0xe   : > { %p334_p11 = scmp.lt.s32.totalorder (!%p286_p10), %s1070_s27, 1  ;;  %s929_s17 = sshll.u32 (!%p286_p10), %s1070_s27, 5 }
   0xf   : > { %289 = sbr.rel (%p286_p10) target bundleno = 437 (0x1b5), region = 48  ;;  %s726_s21 = scalar_lea.hbm (!%p286_p10), %s1332_s7, %s929_s17 }
  0x14   : > { %v918_v0 = vld [vmem:[%s1329_s4 + $0x8] sm:$0xff]  ;;  %v917_v1 = vld [vmem:[%s1329_s4] sm:$0xff]  ;;  %s1186_s19 = scalar_select %p334_p11, %s1070_s27, 1  ;;  %vm407_vm0 = vcmask 261120   ;;  %vm497_vm1 = vcmask 257024  }
  0x15   : > { %930 = vmatpush.bf16.msra.mxu3 %v918_v0  ;;  %438 = vmatpush.bf16.msra.mxu0 %v918_v0  ;;  %v920_v14 = vld [vmem:[%s1327_s2 + $0x8] sm:$0xff]  ;;  %v919_v15 = vld [vmem:[%s1327_s2] sm:$0xff] }
  0x16   : > { %s916_s20 = sshll.u32 %s1186_s19, 7  ;;  %s915_s30 = sshll.u32 %s1186_s19, 5  ;;  %553 = vmatpush.bf16.msra.mxu1 %v920_v14  ;;  %v1233_v34 = vld [vmem:[%s1330_s5] ss:$0 sm:$0xff] }
  0x17   : > { %s1192_s23 = scalar_lea.vmem %s1326_s1, %s916_s20  ;;  %s341_s12 = scalar_lea.vmem %s1325_s0, %s915_s30 }
  0x18   : > { %v371_v2 = vld [vmem:[%s1192_s23 + $0x40] sm:$0xff]  ;;  %v372_v3 = vld [vmem:[%s1192_s23 + $0x48] sm:$0xff]  ;;  %v373_v8 = vld [vmem:[%s1192_s23 + $0x50] sm:$0xff]  ;;  %s849_s30 = sshll.u32 %s1186_s19, 3  ;;  %s330_s19 = sand.u32 1, %s1062_s25  }
  0x19   : > { %931 = vmatpush.bf16.msra.mxu3 %v917_v1  ;;  %439 = vmatpush.bf16.msra.mxu0 %v917_v1  ;;  %v383_v4 = vpack.c.bf16 %v372_v3, %v371_v2  ;;  %v363_v5 = vld [vmem:[%s1192_s23] sm:$0xff]  ;;  %v364_v6 = vld [vmem:[%s1192_s23 + $0x8] sm:$0xff]  ;;  %v374_v9 = vld [vmem:[%s1192_s23 + $0x58] sm:$0xff]  ;;  %s844_s15 = sshll.u32 %s330_s19, 5  ;;  %s713_s27 = scalar_lea.sflag [#allocation4], %s330_s19 }
  0x1a   : > { %v379_v7 = vpack.c.bf16 %v364_v6, %v363_v5  ;;  %v365_v10 = vld [vmem:[%s1192_s23 + $0x10] sm:$0xff]  ;;  %v366_v11 = vld [vmem:[%s1192_s23 + $0x18] sm:$0xff]  ;;  %v384_v12 = vpack.c.bf16 %v374_v9, %v373_v8  ;;  %v514_v16 = vld [vmem:[%s341_s12] sm:$0xff]  ;;  %554 = vmatpush.bf16.msra.mxu1 %v919_v15  ;;  %s332_s16 = scalar_lea.vmem [#allocation3], %s844_s15  ;;  %s1020_s15 = scalar_lea.hbm %s1332_s7, 64 }
  0x1b   : > { %v380_v13 = vpack.c.bf16 %v366_v11, %v365_v10  ;;  %v515_v17 = vld [vmem:[%s341_s12 + $0x8] sm:$0xff]  ;;  %v375_v19 = vld [vmem:[%s1192_s23 + $0x60] sm:$0xff]  ;;  %v516_v25 = vld [vmem:[%s341_s12 + $0x10] sm:$0xff]  ;;  %s727_s22 = sshll.u32 %s332_s16, 4  ;;  %s728_s22 = int_to_ptr.vmem [resolvable:$true] %s727_s22 }
  0x1c   : > { %862 = vmatmul.msk.bf16.vlgmr.msra.gmra.mxu3 %vm407_vm0, %v383_v4  ;;  %858 = vmatmul.msk.bf16.vlgmr.msra.gmra.mxu0 %vm407_vm0, %v379_v7  ;;  %v518_v18 = vpack.c.bf16 %v515_v17, %v514_v16  ;;  %v376_v20 = vld [vmem:[%s1192_s23 + $0x68] sm:$0xff]  ;;  %v367_v21 = vld [vmem:[%s1192_s23 + $0x20] sm:$0xff]  ;;  %v517_v26 = vld [vmem:[%s341_s12 + $0x18] sm:$0xff]  ;;  %s354_s12 = scalar_lea.vmem %s1331_s6, %s849_s30 }
  0x1d   : > { %v368_v22 = vld [vmem:[%s1192_s23 + $0x28] sm:$0xff]  ;;  %v385_v23 = vpack.c.bf16 %v376_v20, %v375_v19  ;;  %v519_v27 = vpack.c.bf16 %v517_v26, %v516_v25  ;;  %v377_v28 = vld [vmem:[%s1192_s23 + $0x70] sm:$0xff]  ;;  %v378_v29 = vld [vmem:[%s1192_s23 + $0x78] sm:$0xff] }
  0x1e   : > { %874 = vmatmul.msk.bf16.vlgmr.msra.gmra.mxu1 %vm407_vm0, %v518_v18  ;;  %v381_v24 = vpack.c.bf16 %v368_v22, %v367_v21  ;;  %v369_v30 = vld [vmem:[%s1192_s23 + $0x30] sm:$0xff]  ;;  %v370_v31 = vld [vmem:[%s1192_s23 + $0x38] sm:$0xff]  ;;  %v386_v32 = vpack.c.bf16 %v378_v29, %v377_v28  ;;  %s729_s23 = sshll.u32 %s726_s21, 4  ;;  %s730_s23 = int_to_ptr.hbm [resolvable:$true] %s729_s23 }
  0x1f   : > { %v382_v33 = vpack.c.bf16 %v370_v31, %v369_v30  ;;  %s1014_s30 = sshra.s32 %s730_s23, 4  ;;  %s1015_s30 = int_to_ptr.hbm [resolvable:$true] %s1014_s30 }
  0x20   : > { %s1016_s8 = scalar_lea.hbm %s1015_s30, 32  ;;  %p1021_p1 = scmp.lt.s32.totalorder %s1015_s30, %s1332_s7 }
  0x21   : > { %p1017_p12 = scmp.ne.s32.totalorder %s1015_s30, %s1016_s8  ;;  %p1022_p2 = scmp.lt.s32.totalorder %s1020_s15, %s1016_s8 }
  0x23   : > { %p1018_p13 = pnand %p1017_p12, %p1163_p4  ;;  %p1023_p3 = por %p1022_p2, %p1021_p1 }
  0x25   : > { %p1019_p0 = pneg %p1018_p13 }
  0x27   : > { %p1024_p5 = pnand %p1023_p3, %p1019_p0 }
  0x2c   : > { %863 = vmatmul.msk.bf16.gmra.mxu3 %vm407_vm0, %v384_v12  ;;  %859 = vmatmul.msk.bf16.gmra.mxu0 %vm407_vm0, %v380_v13 }
  0x2e   : > { %875 = vmatmul.msk.bf16.gmra.mxu1 %vm407_vm0, %v519_v27 }
  0x3c   : > { %864 = vmatmul.msk.bf16.gmra.mxu3 %vm407_vm0, %v385_v23  ;;  %860 = vmatmul.msk.bf16.gmra.mxu0 %vm407_vm0, %v381_v24 }
  0x4c   : > { %865 = vmatmul.msk.bf16.gmra.mxu3 %vm407_vm0, %v386_v32  ;;  %861 = vmatmul.msk.bf16.gmra.mxu0 %vm407_vm0, %v382_v33 }
  0x99   : > { %v441_v35 = vpop.f32.mrf.mxu0 }
  0x9a   : > { %v442_v36 = vadd.f32 %v1233_v34, %v441_v35 }
  0x9b   : > { %v556_v27 = vpop.f32.mrf.mxu1 }
  0x9c   : > { %v481_v37 = vpack.c.bf16 %v442_v36, %v442_v36 }
  0x9e   : > { %498 = vst.msk [vmem:[#allocation2] sm:$0xf] %vm497_vm1, %v481_v37  ;;  %v999_v37 = vld [vmem:[%s1328_s3] ss:$0 sm:$0xff] }
  0x9f   : > { %v461_v38 = vpop.f32.mrf.mxu3 }
  0xa0   : > { %v462_v39 = vadd.f32 %v1233_v34, %v461_v38 }
  0xa1   : > { %v443_v41 = vpop.f32.mrf.mxu0 }
  0xa2   : > { %v489_v40 = vpack.c.bf16 %v462_v39, %v462_v39  ;;  %v444_v42 = vadd.f32 %v1233_v34, %v443_v41 }
  0xa3   : > { %v558_v30 = vpop.f32.mrf.mxu1 }
  0xa4   : > { %506 = vst.msk [vmem:[#allocation2 + $0x20] sm:$0xf] %vm497_vm1, %v489_v40  ;;  %v482_v43 = vpack.c.bf16 %v444_v42, %v444_v42  ;;  %v557_v40 = vadd.f32 %v999_v37, %v556_v27  ;;  %v559_v41 = vadd.f32 %v999_v37, %v558_v30 }
  0xa6   : > { %499 = vst.msk [vmem:[#allocation2 + $0x4] sm:$0xf] %vm497_vm1, %v482_v43 }
  0xa7   : > { %v463_v44 = vpop.f32.mrf.mxu3 }
  0xa8   : > { %v464_v45 = vadd.f32 %v1233_v34, %v463_v44  ;;  %v566_v44 = vpack.c.bf16 %v559_v41, %v557_v40 }
  0xa9   : > { %v446_v47 = vpop.f32.mrf.mxu0 }
  0xaa   : > { %v490_v46 = vpack.c.bf16 %v464_v45, %v464_v45  ;;  %v447_v48 = vadd.f32 %v1233_v34, %v446_v47  ;;  %v1080_v47 = vmov 0  }
  0xac   : > { %507 = vst.msk [vmem:[#allocation2 + $0x24] sm:$0xf] %vm497_vm1, %v490_v46  ;;  %v483_v49 = vpack.c.bf16 %v447_v48, %v447_v48  ;;  %v673_v46 = vld [vmem:[%s354_s12] sm:$0xff] }
  0xad   : > { %v921_v36 = vld [vmem:[#allocation2] sm:$0xff]  ;;  %vm674_vm2 = vnez %v673_v46 }
  0xae   : > { %500 = vst.msk [vmem:[#allocation2 + $0x8] sm:$0xf] %vm497_vm1, %v483_v49  ;;  %v631_v39 = vsel %vm407_vm0, %v921_v36, 0  ;;  %v675_v48 = vsel %vm674_vm2, 16843009, %v1080_v47 }
  0xaf   : > { %v466_v50 = vpop.f32.mrf.mxu3  ;;  %v676_v49 = vunpack.c.0.s8 %v675_v48 }
  0xb0   : > { %v467_v51 = vadd.f32 %v1233_v34, %v466_v50 }
  0xb1   : > { %v448_v53 = vpop.f32.mrf.mxu0  ;;  %v680_v50 = vpack.c.b16 %v676_v49, %v676_v49 }
  0xb2   : > { %v491_v52 = vpack.c.bf16 %v467_v51, %v467_v51  ;;  %v449_v54 = vadd.f32 %v1233_v34, %v448_v53  ;;  %v678_v51 = vunpack.c.2.s8 %v675_v48  ;;  %v677_v53 = vunpack.c.1.s8 %v675_v48 }
  0xb3   : > { %v925_v25 = vld [vmem:[#allocation2 + $0x20] sm:$0xff] }
  0xb4   : > { %508 = vst.msk [vmem:[#allocation2 + $0x28] sm:$0xf] %vm497_vm1, %v491_v52  ;;  %v484_v55 = vpack.c.bf16 %v449_v54, %v449_v54  ;;  %v643_v26 = vsel %vm407_vm0, %v925_v25, 0  ;;  %v681_v52 = vpack.c.b8 %v680_v50, %v680_v50  ;;  %v684_v54 = vpack.c.b16 %v678_v51, %v678_v51 }
  0xb6   : > { %501 = vst.msk [vmem:[#allocation2 + $0xc] sm:$0xf] %vm497_vm1, %v484_v55  ;;  %vm688_vm3 = vnez %v681_v52  ;;  %v682_v55 = vpack.c.b16 %v677_v53, %v677_v53 }
  0xb7   : > { %v468_v56 = vpop.f32.mrf.mxu3 }
  0xb8   : > { %v469_v57 = vadd.f32 %v1233_v34, %v468_v56  ;;  %v685_v56 = vpack.c.b8 %v684_v54, %v684_v54 }
  0xb9   : > { %v451_v59 = vpop.f32.mrf.mxu0 }
  0xba   : > { %v492_v58 = vpack.c.bf16 %v469_v57, %v469_v57  ;;  %v452_v60 = vadd.f32 %v1233_v34, %v451_v59  ;;  %v679_v57 = vunpack.c.3.s8 %v675_v48  ;;  %v683_v59 = vpack.c.b8 %v682_v55, %v682_v55 }
  0xbb   : > { %vm690_vm4 = vnez %v685_v56 }
  0xbc   : > { %509 = vst.msk [vmem:[#allocation2 + $0x2c] sm:$0xf] %vm497_vm1, %v492_v58  ;;  %v485_v61 = vpack.c.bf16 %v452_v60, %v452_v60  ;;  %v692_v58 = vsel %vm688_vm3, 16843009, %v1080_v47  ;;  %vm689_vm5 = vnez %v683_v59 }
  0xbd   : > { %v922_v33 = vld [vmem:[#allocation2 + $0x8] sm:$0xff]  ;;  %v696_v60 = vunpack.c.0.s8 %v692_v58 }
  0xbe   : > { %502 = vst.msk [vmem:[#allocation2 + $0x10] sm:$0xf] %vm497_vm1, %v485_v61  ;;  %v634_v35 = vsel %vm407_vm0, %v922_v33, 0  ;;  %v686_v61 = vpack.c.b16 %v679_v57, %v679_v57 }
  0xbf   : > { %v471_v62 = vpop.f32.mrf.mxu3  ;;  %vm700_vm6 = vcmp.ne.s32.totalorder %v696_v60, 0 }
  0xc0   : > { %v472_v63 = vadd.f32 %v1233_v34, %v471_v62  ;;  %v694_v62 = vsel %vm690_vm4, 16843009, %v1080_v47 }
  0xc1   : > { %v453_v1 = vpop.f32.mrf.mxu0 }
  0xc2   : > { %v493_v0 = vpack.c.bf16 %v472_v63, %v472_v63  ;;  %v454_v2 = vadd.f32 %v1233_v34, %v453_v1  ;;  %v687_v63 = vpack.c.b8 %v686_v61, %v686_v61 }
  0xc3   : > { %v926_v23 = vld [vmem:[#allocation2 + $0x28] sm:$0xff] }
  0xc4   : > { %510 = vst.msk [vmem:[#allocation2 + $0x30] sm:$0xf] %vm497_vm1, %v493_v0  ;;  %v486_v3 = vpack.c.bf16 %v454_v2, %v454_v2  ;;  %v646_v24 = vsel %vm407_vm0, %v926_v23, 0  ;;  %v693_v0 = vsel %vm689_vm5, 16843009, %v1080_v47  ;;  %v698_v2 = vunpack.c.0.s8 %v694_v62 }
  0xc5   : > { %vm691_vm7 = vnez %v687_v63 }
  0xc6   : > { %503 = vst.msk [vmem:[#allocation2 + $0x14] sm:$0xf] %vm497_vm1, %v486_v3  ;;  %vm702_vm8 = vcmp.ne.s32.totalorder %v698_v2, 0 }
  0xc7   : > { %v473_v4 = vpop.f32.mrf.mxu3 }
  0xc8   : > { %v474_v5 = vadd.f32 %v1233_v34, %v473_v4  ;;  %v697_v4 = vunpack.c.0.s8 %v693_v0 }
  0xc9   : > { %v456_v7 = vpop.f32.mrf.mxu0 }
  0xca   : > { %v494_v6 = vpack.c.bf16 %v474_v5, %v474_v5  ;;  %v457_v8 = vadd.f32 %v1233_v34, %v456_v7  ;;  %v695_v5 = vsel %vm691_vm7, 16843009, %v1080_v47  ;;  %vm701_vm9 = vcmp.ne.s32.totalorder %v697_v4, 0 }
  0xcc   : > { %511 = vst.msk [vmem:[#allocation2 + $0x34] sm:$0xf] %vm497_vm1, %v494_v6  ;;  %v487_v9 = vpack.c.bf16 %v457_v8, %v457_v8 }
  0xcd   : > { %v923_v31 = vld [vmem:[#allocation2 + $0x10] sm:$0xff] }
  0xce   : > { %504 = vst.msk [vmem:[#allocation2 + $0x18] sm:$0xf] %vm497_vm1, %v487_v9  ;;  %v637_v32 = vsel %vm407_vm0, %v923_v31, 0  ;;  %v699_v9 = vunpack.c.0.s8 %v695_v5 }
  0xcf   : > { %v476_v10 = vpop.f32.mrf.mxu3 }
  0xd0   : > { %v477_v11 = vadd.f32 %v1233_v34, %v476_v10  ;;  %vm703_vm10 = vcmp.ne.s32.totalorder %v699_v9, 0 }
  0xd1   : > { %v458_v13 = vpop.f32.mrf.mxu0 }
  0xd2   : > { %v495_v12 = vpack.c.bf16 %v477_v11, %v477_v11  ;;  %v459_v14 = vadd.f32 %v1233_v34, %v458_v13 }
  0xd3   : > { %v927_v21 = vld [vmem:[#allocation2 + $0x30] sm:$0xff] }
  0xd4   : > { %512 = vst.msk [vmem:[#allocation2 + $0x38] sm:$0xf] %vm497_vm1, %v495_v12  ;;  %v488_v15 = vpack.c.bf16 %v459_v14, %v459_v14  ;;  %v649_v22 = vsel %vm407_vm0, %v927_v21, 0 }
  0xd6   : > { %505 = vst.msk [vmem:[#allocation2 + $0x1c] sm:$0xf] %vm497_vm1, %v488_v15 }
  0xd7   : > { %v478_v16 = vpop.f32.mrf.mxu3 }
  0xd8   : > { %v479_v17 = vadd.f32 %v1233_v34, %v478_v16  ;;  %v561_v34 = vpop.f32.mrf.mxu1 }
  0xd9   : > { %v562_v42 = vadd.f32 %v999_v37, %v561_v34 }
  0xda   : > { %v496_v18 = vpack.c.bf16 %v479_v17, %v479_v17 }
  0xdc   : > { %513 = vst.msk [vmem:[#allocation2 + $0x3c] sm:$0xf] %vm497_vm1, %v496_v18 }
  0xdd   : > { %v924_v28 = vld [vmem:[#allocation2 + $0x18] sm:$0xff] }
  0xde   : > { %v640_v29 = vsel %vm407_vm0, %v924_v28, 0 }
  0xe0   : > { %v563_v38 = vpop.f32.mrf.mxu1 }
  0xe1   : > { %v564_v43 = vadd.f32 %v999_v37, %v563_v38 }
  0xe3   : > { %v928_v19 = vld [vmem:[#allocation2 + $0x38] sm:$0xff]  ;;  %v567_v45 = vpack.c.bf16 %v564_v43, %v562_v42 }
  0xe4   : > { %v652_v20 = vsel %vm407_vm0, %v928_v19, 0 }
  0xe5   : > { %654 = vmatpush.bf16.xpose.msrb.mxu1 %v652_v20  ;;  %932 = vmatpush.bf16.xpose.msra.mxu2 %v652_v20 }
  0xed   : > { %655 = vmatpush.bf16.xpose.msrb.mxu1 %v649_v22  ;;  %933 = vmatpush.bf16.xpose.msra.mxu2 %v649_v22 }
  0xf5   : > { %656 = vmatpush.bf16.xpose.msrb.mxu1 %v646_v24  ;;  %934 = vmatpush.bf16.xpose.msra.mxu2 %v646_v24 }
  0xfd   : > { %657 = vmatpush.bf16.xpose.msrb.mxu1 %v643_v26  ;;  %935 = vmatpush.bf16.xpose.msra.mxu2 %v643_v26 }
 0x105   : > { %658 = vmatpush.bf16.xpose.msrb.mxu1 %v640_v29  ;;  %936 = vmatpush.bf16.xpose.msra.mxu2 %v640_v29 }
 0x10d   : > { %659 = vmatpush.bf16.xpose.msrb.mxu1 %v637_v32  ;;  %937 = vmatpush.bf16.xpose.msra.mxu2 %v637_v32 }
 0x115   : > { %660 = vmatpush.bf16.xpose.msrb.mxu1 %v634_v35  ;;  %938 = vmatpush.bf16.xpose.msra.mxu2 %v634_v35 }
 0x11d   : > { %661 = vmatpush.bf16.xpose.msrb.mxu1 %v631_v39  ;;  %939 = vmatpush.bf16.xpose.msra.mxu2 %v631_v39 }
 0x124   : > { %908 = vmatmul.msk.bf16.vlgmr.msrb.gmra.mxu1 %vm407_vm0, %v566_v44  ;;  %909 = vmatmul.msk.bf16.vlgmr.msra.gmra.mxu2 %vm407_vm0, %v567_v45 }
 0x1a1   : > { %v663_v1 = vpop.f32.mrf.mxu1 }
 0x1a2   : > { %v704_v3 = vsel %vm700_vm6, -inf, %v663_v1 }
 0x1a3   : > { %708 = vst [vmem:[%s332_s16] sm:$0xff] %v704_v3 }
 0x1a7   : > { %v668_v6 = vpop.f32.mrf.mxu2 }
 0x1a8   : > { %v706_v7 = vsel %vm702_vm8, -inf, %v668_v6 }
 0x1a9   : > { %710 = vst [vmem:[%s332_s16 + $0x10] sm:$0xff] %v706_v7  ;;  %v665_v8 = vpop.f32.mrf.mxu1 }
 0x1aa   : > { %v705_v10 = vsel %vm701_vm9, -inf, %v665_v8 }
 0x1ab   : > { %709 = vst [vmem:[%s332_s16 + $0x8] sm:$0xff] %v705_v10 }
 0x1af   : > { %v670_v11 = vpop.f32.mrf.mxu2 }
 0x1b0   : > { %v707_v12 = vsel %vm703_vm10, -inf, %v670_v11 }
 0x1b1   : > { %711 = vst [vmem:[%s332_s16 + $0x18] sm:$0xff] %v707_v12 }
 0x1b2   : > { %1027 = shalt.err (!%p1024_p5)
}
 0x1b3   : > { %s1081_s19 = smov 128   ;;  %s1082_s16 = smov 8  }
 0x1b4   : > { %940 = dma.vmem_to_hbm [thread:$0]  (%p1163_p4), %s728_s22, 512, %s730_s23, %s713_s27, %s1081_s19, %s1081_s19, %s1082_s16  }
 0x1b5 PF: > { %p946_p6 = scmp.ge.s32.totalorder %s1078_s29, 2  ;;  %s744_s20 = sand.u32 1, %s1058_s24  }
 0x1b6   : > { %s745_s21 = scalar_lea.sflag [#allocation4], %s744_s20 }
 0x1b7   : > { %p943_p7 = pnand %p946_p6, %p1170_p8 }
 0x1b9   : > { %p944_p9 = pneg %p943_p7 }
 0x1bb   : > { %1053 = dma.done.wait (%p944_p9), %s745_s21, 512  }
 0x1bc   : > { %1055 = vsyncadd (%p944_p9), %s745_s21, 4294966784  ;;  %s20_s29 = sadd.s32 1, %s1078_s29   ;;  %s1335_s24 = smov %s1062_s25 }
 0x1bd   : > { %p17_p10 = scmp.ge.s32.totalorder %s20_s29, 4   ;;  %s1336_s25 = smov %s1066_s26 }
 0x1be   : > { %s1337_s26 = smov %s1176_s14  ;;  %s1338_s27 = smov %s1074_s28 }
 0x1bf   : > { %s1339_s28 = smov %s1341_s9  ;;  %19 = sbr.rel (!%p17_p10) target bundleno = 4 (0x4), region = 93 }
 0x1c4   :  { %751 = vsyncpa [#allocation4], 1 }
 0x1c5   :  { %753 = vsyncpa [#allocation4 + $0x1], 1 }

</bundles_post_ra>
